<compile_context>
chip_gen: v5e
topology: v5e:2x2
jax: 0.10.0
libtpu: 0.0.40
codegen_flags: <defaults>
</compile_context>

<pallas_src>
import numpy as np
import jax
import jax.numpy as jnp
from jax.experimental import pallas as pl
from jax.experimental.pallas import tpu as pltpu

_LANES = 128                                # vreg lane width
_WS_BUDGET_BYTES = 24 * 1024 * 1024         # double-buffered working-set target
_VMEM_LIMIT_BYTES = 48 * 1024 * 1024        # safe headroom on v5e/v6e/v7x


def _add_pe_kernel(x_ref, pe_ref, o_ref):
    # x_ref/o_ref: (Bblk, TR, L); pe_ref: (1, TR, L) -> broadcast over batch.
    o_ref[...] = (x_ref[...] + pe_ref[...]).astype(o_ref.dtype)


def make_positional_encoding(seq_len: int, embedding_size: int,
                             dtype=jnp.float32) -> jnp.ndarray:
    """Deterministic PE buffer identical to the PyTorch __init__ (shape (1, S, E))."""
    assert embedding_size % 2 == 0, "embedding_size must be even (sin/cos interleave)"
    positions = np.arange(seq_len, dtype=np.float32)[:, None]                     # (S, 1)
    div_term = np.exp(
        np.arange(0, embedding_size, 2, dtype=np.float32)
        * -(np.log(10000.0) / embedding_size)
    )                                                                              # (E/2,)
    pe = np.zeros((seq_len, embedding_size), dtype=np.float32)
    pe[:, 0::2] = np.sin(positions * div_term)
    pe[:, 1::2] = np.cos(positions * div_term)
    return jnp.asarray(pe, dtype=dtype)[None, :, :]                                # (1, S, E)


def positional_encoding_forward(x: jnp.ndarray, pe: jnp.ndarray,
                                *, ws_budget_bytes: int = _WS_BUDGET_BYTES) -> jnp.ndarray:
    """x: (B, S, E); pe: (1, S, E). Returns x + pe (broadcast over batch), dtype = x.dtype."""
    B, S, E = x.shape
    assert pe.shape == (1, S, E)

    # Cast pe once outside the hot path (halves its DMA bytes for bf16 x).
    if pe.dtype != x.dtype:
        pe = pe.astype(x.dtype)

    N = S * E
    itemsize = x.dtype.itemsize
    # Sublane-packing multiple: 8 (f32), 16 (bf16/f16), 32 (int8/fp8).
    sub = 8 * max(1, 4 // itemsize)

    if N % _LANES == 0:
        # Lane-dense layout: every store is a full-width unmasked vst.
        R, L = N // _LANES, _LANES
        x3 = x.reshape(B, R, L)
        pe3 = pe.reshape(1, R, L)
    else:
        # Ragged E: keep the natural layout; full E as last dim is legal
        # (equals the full array dim).  Masked stores beat an extra HBM pass.
        R, L = S, E
        x3 = x
        pe3 = pe

    fold_batch = B <= 8

    # --- tile sizing from the double-buffered working-set budget -------------
    bytes_per_row = L * itemsize
    blocks_per_step = (2 * B + 1) if fold_batch else 3     # x + out (+pe) blocks
    rows = ws_budget_bytes // (2 * blocks_per_step * bytes_per_row)
    rows = max(sub, (rows // sub) * sub)
    if rows >= R:
        tr, n_tiles = R, 1                                  # full extent -> always legal
    else:
        n_tiles = pl.cdiv(R, rows)
        tr = ((pl.cdiv(R, n_tiles) + sub - 1) // sub) * sub  # balance tiles, keep sublane mult.
        if tr >= R:
            tr, n_tiles = R, 1
        else:
            n_tiles = pl.cdiv(R, tr)

    cparams = pltpu.CompilerParams(
        dimension_semantics=("parallel",) if fold_batch else ("parallel", "parallel"),
        vmem_limit_bytes=_VMEM_LIMIT_BYTES,
    )

    if fold_batch:
        out3 = pl.pallas_call(
            _add_pe_kernel,
            out_shape=jax.ShapeDtypeStruct((B, R, L), x.dtype),
            grid_spec=pltpu.PrefetchScalarGridSpec(
                num_scalar_prefetch=0,
                grid=(n_tiles,),
                in_specs=[
                    pl.BlockSpec((B, tr, L), lambda t: (0, t, 0)),   # x (batch folded)
                    pl.BlockSpec((1, tr, L), lambda t: (0, t, 0)),   # pe
                ],
                out_specs=pl.BlockSpec((B, tr, L), lambda t: (0, t, 0)),
            ),
            compiler_params=cparams,
        )(x3, pe3)
    else:
        out3 = pl.pallas_call(
            _add_pe_kernel,
            out_shape=jax.ShapeDtypeStruct((B, R, L), x.dtype),
            grid_spec=pltpu.PrefetchScalarGridSpec(
                num_scalar_prefetch=0,
                # batch is the INNER grid axis: pe's block index is constant
                # across consecutive steps, so its tile stays resident.
                grid=(n_tiles, B),
                in_specs=[
                    pl.BlockSpec((1, tr, L), lambda t, b: (b, t, 0)),  # x
                    pl.BlockSpec((1, tr, L), lambda t, b: (0, t, 0)),  # pe (batch-invariant)
                ],
                out_specs=pl.BlockSpec((1, tr, L), lambda t, b: (b, t, 0)),
            ),
            compiler_params=cparams,
        )(x3, pe3)

    return out3.reshape(B, S, E)


if __name__ == "__main__":
    batch, seq_len, embedding_size = 2, 8, 32

    key = jax.random.PRNGKey(0)
    x = jax.random.normal(key, (batch, seq_len, embedding_size), dtype=jnp.float32)
    pe = make_positional_encoding(seq_len, embedding_size)

    fwd = jax.jit(positional_encoding_forward)
    out = jax.block_until_ready(fwd(x, pe))
    ref = x + pe
    assert out.shape == (batch, seq_len, embedding_size)
    assert jnp.allclose(out, ref, atol=1e-6), "mismatch vs reference (lane-dense path)"

    # Exercise the ragged path (S*E not a multiple of 128): no pad, full-E blocks.
    s2, e2 = 7, 20
    key2 = jax.random.PRNGKey(0)
    x2 = jax.random.normal(key2, (batch, s2, e2), dtype=jnp.float32)
    pe2 = make_positional_encoding(s2, e2)
    out2 = jax.block_until_ready(jax.jit(positional_encoding_forward)(x2, pe2))
    assert jnp.allclose(out2, x2 + pe2, atol=1e-6), "mismatch vs reference (ragged path)"

    print("KERNEL_OK")
</pallas_src>

<mosaic_0001>
module attributes {stable_mosaic.version = 11 : i64} {
  func.func @_add_pe_kernel(%arg0: i32, %arg1: memref<2x2x128xf32, #tpu.memory_space<vmem>>, %arg2: memref<1x2x128xf32, #tpu.memory_space<vmem>>, %arg3: memref<2x2x128xf32, #tpu.memory_space<vmem>>) attributes {dimension_semantics = [#tpu.dimension_semantics<parallel>], iteration_bounds = array<i64: 1>, scalar_prefetch = 0 : i64, scratch_operands = 0 : i64, tpu.core_type = #tpu.core_type<tc>, window_params = [{transform_indices = @transform_0, window_bounds = array<i64: 2, 2, 128>}, {transform_indices = @transform_1, window_bounds = array<i64: 1, 2, 128>}, {transform_indices = @transform_2, window_bounds = array<i64: 2, 2, 128>}]} {
    %c0 = arith.constant 0 : index
    %c0_0 = arith.constant 0 : index
    %c0_1 = arith.constant 0 : index
    %0 = vector.load %arg1[%c0, %c0_0, %c0_1] : memref<2x2x128xf32, #tpu.memory_space<vmem>>, vector<2x2x128xf32>
    %c0_2 = arith.constant 0 : index
    %c0_3 = arith.constant 0 : index
    %c0_4 = arith.constant 0 : index
    %1 = vector.load %arg2[%c0_2, %c0_3, %c0_4] : memref<1x2x128xf32, #tpu.memory_space<vmem>>, vector<1x2x128xf32>
    %2 = vector.broadcast %1 : vector<1x2x128xf32> to vector<2x2x128xf32>
    %3 = arith.addf %0, %2 : vector<2x2x128xf32>
    %c0_5 = arith.constant 0 : index
    %c0_6 = arith.constant 0 : index
    %c0_7 = arith.constant 0 : index
    %4 = vector.load %arg3[%c0_5, %c0_6, %c0_7] : memref<2x2x128xf32, #tpu.memory_space<vmem>>, vector<2x2x128xf32>
    tpu.vector_store %arg3[%c0_5, %c0_6, %c0_7], %3 {strides = array<i32>} : memref<2x2x128xf32, #tpu.memory_space<vmem>>, vector<2x2x128xf32>,
    return
  }
  func.func @transform_0(%arg0: i32) -> (i32, i32, i32) {
    %c0_i32 = arith.constant 0 : i32
    %c0_i32_0 = arith.constant 0 : i32
    %c0_i32_1 = arith.constant 0 : i32
    return %c0_i32, %arg0, %c0_i32_0 : i32, i32, i32
  }
  func.func @transform_1(%arg0: i32) -> (i32, i32, i32) {
    %c0_i32 = arith.constant 0 : i32
    %c0_i32_0 = arith.constant 0 : i32
    %c0_i32_1 = arith.constant 0 : i32
    return %c0_i32, %arg0, %c0_i32_0 : i32, i32, i32
  }
  func.func @transform_2(%arg0: i32) -> (i32, i32, i32) {
    %c0_i32 = arith.constant 0 : i32
    %c0_i32_0 = arith.constant 0 : i32
    %c0_i32_1 = arith.constant 0 : i32
    return %c0_i32, %arg0, %c0_i32_0 : i32, i32, i32
  }
}

</mosaic_0001>

<bundles_post_ra>
// kernel: positional_encoding_forward.1
= control target key start
LH: loop header
LB: loop body
LE: loop exit
PB: predicated region body
PF: predicated region fallthrough
CT: control target
= control target key end

     0   :  { %s52_s0 = inlined_call_operand.vmem [shape: f32[2,2,128], index: 0, kind: input, shape index: {}]   ;;  %s53_s1 = inlined_call_operand.vmem [shape: f32[1,2,128], index: 1, kind: input, shape index: {}]   ;;  %s54_s2 = inlined_call_operand.vmem [shape: f32[2,2,128], index: 2, kind: output, shape index: {}]  }
   0x1   :  { %v11_v0 = vld [vmem:[%s52_s0] sm:$0x3]  ;;  %v12_v2 = vld [vmem:[%s52_s0 + $0x2] sm:$0x3] }
   0x2   :  { %v13_v1 = vld [vmem:[%s53_s1] sm:$0x3] }
   0x3   :  { %v14_v3 = vadd.f32 %v13_v1, %v11_v0  ;;  %v15_v4 = vadd.f32 %v13_v1, %v12_v2 }
   0x5   :  { %16 = vst [vmem:[%s54_s2] sm:$0x3] %v14_v3 }
   0x6   :  { %17 = vst [vmem:[%s54_s2 + $0x2] sm:$0x3] %v15_v4 }

</bundles_post_ra>
